<compile_context>
chip_gen: v7x
topology: tpu7x:2x2x1
jax: 0.10.0
libtpu: 0.0.40
codegen_flags: <defaults>
</compile_context>

<pallas_src>
import jax
import jax.numpy as jnp
from jax.experimental import pallas as pl
from jax.experimental.pallas import tpu as pltpu


def policy_kernel(obs_ref, wvec_ref, w1o_ref, w1w_ref, b12_ref, w2_ref, w3_ref,
                  osb_ref, out_ref):
    obs = obs_ref[...]
    wv = wvec_ref[...]
    w1o = w1o_ref[...]
    w1w = w1w_ref[...]
    w2 = w2_ref[...]
    w3 = w3_ref[...]
    b12 = b12_ref[...]          # (2, H)       f32: rows = [b1, b2]
    osb = osb_ref[...]          # (3, out_pad) f32: rows = [b3, action_scale, action_bias]

    # Layer 1 — fused concat: concat(obs, w) @ W1 == obs @ W1[:obs_dim] + w @ W1[obs_dim:]
    h = (jnp.dot(obs.astype(w1o.dtype), w1o, preferred_element_type=jnp.float32)
         + jnp.dot(wv.astype(w1w.dtype), w1w, preferred_element_type=jnp.float32)
         + b12[0:1, :])
    h = jnp.maximum(h, 0.0)
    # Layer 2
    h = jnp.dot(h.astype(w2.dtype), w2, preferred_element_type=jnp.float32) + b12[1:2, :]
    h = jnp.maximum(h, 0.0)
    # Mean head + tanh squash (EUP) + rescale to action space (all elementwise in f32).
    a = jnp.tanh(jnp.dot(h.astype(w3.dtype), w3, preferred_element_type=jnp.float32)
                 + osb[0:1, :])
    out_ref[...] = a * osb[1:2, :] + osb[2:3, :]


def _policy_call_blockless(obs, wv, params, out_pad):
    """Small batch: no grid, every operand is a whole-array VMEM ref."""
    B = obs.shape[0]
    vmem = pl.BlockSpec(memory_space=pltpu.MemorySpace.VMEM)
    return pl.pallas_call(
        policy_kernel,
        out_shape=jax.ShapeDtypeStruct((B, out_pad), jnp.float32),
        in_specs=[vmem] * 8,
        out_specs=vmem,
    )(obs, wv, *params)


def _policy_call_tiled(obs, wv, params, out_pad, tile_b):
    """Large batch: tile over batch; weights stay VMEM-resident across the grid."""
    B, obs_dim = obs.shape
    rew_dim = wv.shape[1]
    w1o, w1w, b12, w2, w3, osb = params
    grid = (B // tile_b,)
    return pl.pallas_call(
        policy_kernel,
        out_shape=jax.ShapeDtypeStruct((B, out_pad), jnp.float32),
        grid=grid,
        in_specs=[
            pl.BlockSpec((tile_b, obs_dim), lambda i: (i, 0)),
            pl.BlockSpec((tile_b, rew_dim), lambda i: (i, 0)),
            pl.BlockSpec(w1o.shape, lambda i: (0, 0)),
            pl.BlockSpec(w1w.shape, lambda i: (0, 0)),
            pl.BlockSpec(b12.shape, lambda i: (0, 0)),
            pl.BlockSpec(w2.shape, lambda i: (0, 0)),
            pl.BlockSpec(w3.shape, lambda i: (0, 0)),
            pl.BlockSpec(osb.shape, lambda i: (0, 0)),
        ],
        out_specs=pl.BlockSpec((tile_b, out_pad), lambda i: (i, 0)),
        compiler_params=pltpu.CompilerParams(
            dimension_semantics=("parallel",)),   # v7x: 2 TensorCores share the batch axis
    )(obs, wv, w1o, w1w, b12, w2, w3, osb)


def policy_forward(obs, wv, params, out_dim, tile_b=128):
    """Fused Policy forward. Returns [B, out_dim] actions."""
    obs = obs.astype(jnp.float32)
    wv = wv.astype(jnp.float32)
    B = obs.shape[0]
    out_pad = params[-1].shape[1]
    if B % tile_b == 0 and (B // tile_b) > 1:
        out = _policy_call_tiled(obs, wv, params, out_pad, tile_b)
    else:
        out = _policy_call_blockless(obs, wv, params, out_pad)
    return out[:, :out_dim] if out_pad != out_dim else out


def make_params(key, obs_dim, rew_dim, hidden, out_dim, action_low, action_high,
                matmul_dtype=jnp.float32):
    """Deterministic synthetic parameter init (stand-in for layer_init), packed for the kernel.

    Returns (w1_obs, w1_w, b12, w2, w3, osb):
      w1_obs (obs_dim, H), w1_w (rew_dim, H), w2 (H, H), w3 (H, out_pad) in `matmul_dtype`;
      b12 (2, H) f32 = [b1; b2]; osb (3, out_pad) f32 = [b3; action_scale; action_bias].
    Mean-head arrays are zero-padded along lanes to a multiple of 128.
    """
    in_dim = obs_dim + rew_dim
    ks = jax.random.split(key, 6)

    def lin(kw, kb, fan_in, fan_out):
        w = jax.random.normal(kw, (fan_in, fan_out), jnp.float32) / jnp.sqrt(fan_in)
        b = 0.01 * jax.random.normal(kb, (fan_out,), jnp.float32)
        return w, b

    w1, b1 = lin(ks[0], ks[1], in_dim, hidden)
    w2, b2 = lin(ks[2], ks[3], hidden, hidden)
    w3, b3 = lin(ks[4], ks[5], hidden, out_dim)

    scale = ((action_high - action_low) / 2.0).astype(jnp.float32).reshape(out_dim)
    bias = ((action_high + action_low) / 2.0).astype(jnp.float32).reshape(out_dim)

    out_pad = ((out_dim + 127) // 128) * 128
    pad = out_pad - out_dim
    w3p = jnp.pad(w3, ((0, 0), (0, pad)))
    b3p = jnp.pad(b3, (0, pad))
    scalep = jnp.pad(scale, (0, pad))
    biasp = jnp.pad(bias, (0, pad))

    b12 = jnp.stack([b1, b2], axis=0)                  # (2, H)       f32
    osb = jnp.stack([b3p, scalep, biasp], axis=0)      # (3, out_pad) f32

    w1_obs = w1[:obs_dim].astype(matmul_dtype)
    w1_w = w1[obs_dim:].astype(matmul_dtype)
    return (w1_obs, w1_w, b12, w2.astype(matmul_dtype), w3p.astype(matmul_dtype), osb)


def policy_reference(obs, wv, params, out_dim):
    """Pure-JAX f32 reference of the PyTorch forward (noise=None path)."""
    w1o, w1w, b12, w2, w3, osb = params
    x = jnp.concatenate([obs, wv], axis=-1)
    w1 = jnp.concatenate([w1o, w1w], axis=0).astype(jnp.float32)
    h = jnp.maximum(x @ w1 + b12[0], 0.0)
    h = jnp.maximum(h @ w2.astype(jnp.float32) + b12[1], 0.0)
    a = jnp.tanh(h @ w3.astype(jnp.float32) + osb[0])
    out = a * osb[1] + osb[2]
    return out[:, :out_dim]


if __name__ == "__main__":
    # Shapes consistent with the module: obs_dim=16, rew_dim=4 preference weights,
    # output_dim=6 actions, net_arch=[32, 32].
    obs_dim, rew_dim, out_dim, hidden = 16, 4, 6, 32
    key = jax.random.PRNGKey(0)
    k_obs, k_w, k_p, k_obs2, k_w2 = jax.random.split(key, 5)

    action_low = -2.0 * jnp.ones((out_dim,), jnp.float32)
    action_high = 2.0 * jnp.ones((out_dim,), jnp.float32)

    # --- small batch (blockless path, f32 matmul operands) ---
    B_small = 8
    params_f32 = make_params(k_p, obs_dim, rew_dim, hidden, out_dim,
                             action_low, action_high, jnp.float32)
    obs = jax.random.normal(k_obs, (B_small, obs_dim), jnp.float32)
    wvec = jax.random.uniform(k_w, (B_small, rew_dim), jnp.float32)
    wvec = wvec / jnp.sum(wvec, axis=-1, keepdims=True)

    out_small = jax.block_until_ready(policy_forward(obs, wvec, params_f32, out_dim))
    ref_small = policy_reference(obs, wvec, params_f32, out_dim)
    assert out_small.shape == (B_small, out_dim)
    assert jnp.allclose(out_small, ref_small, atol=1e-4, rtol=1e-4), "f32 mismatch"

    # --- large batch (batch-tiled path, parallel grid axis, bf16 matmul operands) ---
    B_big, TILE_B = 512, 128
    params_bf16 = make_params(k_p, obs_dim, rew_dim, hidden, out_dim,
                              action_low, action_high, jnp.bfloat16)
    obs_b = jax.random.normal(k_obs2, (B_big, obs_dim), jnp.float32)
    wvec_b = jax.random.uniform(k_w2, (B_big, rew_dim), jnp.float32)
    wvec_b = wvec_b / jnp.sum(wvec_b, axis=-1, keepdims=True)

    out_big = jax.block_until_ready(
        policy_forward(obs_b, wvec_b, params_bf16, out_dim, tile_b=TILE_B))
    ref_big = policy_reference(obs_b, wvec_b, params_bf16, out_dim)
    assert out_big.shape == (B_big, out_dim)
    assert jnp.allclose(out_big, ref_big, atol=1e-1), "bf16 mismatch"

    # TODO(synk): optional Gaussian exploration branch (noise/noise_clip) of Policy.forward
    # is not part of the default noise=None path and is intentionally left out.
    print("KERNEL_OK")
</pallas_src>

<mosaic_0001>
module attributes {stable_mosaic.version = 11 : i64} {
  func.func @policy_kernel(%arg0: memref<8x16xf32, #tpu.memory_space<vmem>>, %arg1: memref<8x4xf32, #tpu.memory_space<vmem>>, %arg2: memref<16x32xf32, #tpu.memory_space<vmem>>, %arg3: memref<4x32xf32, #tpu.memory_space<vmem>>, %arg4: memref<2x32xf32, #tpu.memory_space<vmem>>, %arg5: memref<32x32xf32, #tpu.memory_space<vmem>>, %arg6: memref<32x128xf32, #tpu.memory_space<vmem>>, %arg7: memref<3x128xf32, #tpu.memory_space<vmem>>, %arg8: memref<8x128xf32, #tpu.memory_space<vmem>>) attributes {dimension_semantics = [], scalar_prefetch = 0 : i64, scratch_operands = 0 : i64, tpu.core_type = #tpu.core_type<tc>} {
    %c0 = arith.constant 0 : index
    %c0_0 = arith.constant 0 : index
    %0 = vector.load %arg0[%c0, %c0_0] : memref<8x16xf32, #tpu.memory_space<vmem>>, vector<8x16xf32>
    %c0_1 = arith.constant 0 : index
    %c0_2 = arith.constant 0 : index
    %1 = vector.load %arg1[%c0_1, %c0_2] : memref<8x4xf32, #tpu.memory_space<vmem>>, vector<8x4xf32>
    %c0_3 = arith.constant 0 : index
    %c0_4 = arith.constant 0 : index
    %2 = vector.load %arg2[%c0_3, %c0_4] : memref<16x32xf32, #tpu.memory_space<vmem>>, vector<16x32xf32>
    %c0_5 = arith.constant 0 : index
    %c0_6 = arith.constant 0 : index
    %3 = vector.load %arg3[%c0_5, %c0_6] : memref<4x32xf32, #tpu.memory_space<vmem>>, vector<4x32xf32>
    %c0_7 = arith.constant 0 : index
    %c0_8 = arith.constant 0 : index
    %4 = vector.load %arg5[%c0_7, %c0_8] : memref<32x32xf32, #tpu.memory_space<vmem>>, vector<32x32xf32>
    %c0_9 = arith.constant 0 : index
    %c0_10 = arith.constant 0 : index
    %5 = vector.load %arg6[%c0_9, %c0_10] : memref<32x128xf32, #tpu.memory_space<vmem>>, vector<32x128xf32>
    %c0_11 = arith.constant 0 : index
    %c0_12 = arith.constant 0 : index
    %6 = vector.load %arg4[%c0_11, %c0_12] : memref<2x32xf32, #tpu.memory_space<vmem>>, vector<2x32xf32>
    %c0_13 = arith.constant 0 : index
    %c0_14 = arith.constant 0 : index
    %7 = vector.load %arg7[%c0_13, %c0_14] : memref<3x128xf32, #tpu.memory_space<vmem>>, vector<3x128xf32>
    %cst = arith.constant dense<0.000000e+00> : vector<8x32xf32>
    %8 = tpu.matmul %0, %2, %cst {dimension_numbers = #tpu.dot_dimension_numbers<[1], [0], [0], [1], [0, 0, 1, 1], [], []>} : vector<8x16xf32>, vector<16x32xf32>, vector<8x32xf32> -> vector<8x32xf32>
    %cst_15 = arith.constant dense<0.000000e+00> : vector<8x32xf32>
    %9 = tpu.matmul %1, %3, %cst_15 {dimension_numbers = #tpu.dot_dimension_numbers<[1], [0], [0], [1], [0, 0, 1, 1], [], []>} : vector<8x4xf32>, vector<4x32xf32>, vector<8x32xf32> -> vector<8x32xf32>
    %10 = arith.addf %8, %9 : vector<8x32xf32>
    %11 = vector.extract_strided_slice %6 {offsets = [0, 0], sizes = [1, 32], strides = [1, 1]} : vector<2x32xf32> to vector<1x32xf32>
    %12 = vector.broadcast %11 : vector<1x32xf32> to vector<8x32xf32>
    %13 = arith.addf %10, %12 : vector<8x32xf32>
    %cst_16 = arith.constant 0.000000e+00 : f32
    %14 = vector.broadcast %cst_16 : f32 to vector<8x32xf32>
    %15 = arith.maximumf %13, %14 : vector<8x32xf32>
    %cst_17 = arith.constant dense<0.000000e+00> : vector<8x32xf32>
    %16 = tpu.matmul %15, %4, %cst_17 {dimension_numbers = #tpu.dot_dimension_numbers<[1], [0], [0], [1], [0, 0, 1, 1], [], []>} : vector<8x32xf32>, vector<32x32xf32>, vector<8x32xf32> -> vector<8x32xf32>
    %17 = vector.extract_strided_slice %6 {offsets = [1, 0], sizes = [1, 32], strides = [1, 1]} : vector<2x32xf32> to vector<1x32xf32>
    %18 = vector.broadcast %17 : vector<1x32xf32> to vector<8x32xf32>
    %19 = arith.addf %16, %18 : vector<8x32xf32>
    %cst_18 = arith.constant 0.000000e+00 : f32
    %20 = vector.broadcast %cst_18 : f32 to vector<8x32xf32>
    %21 = arith.maximumf %19, %20 : vector<8x32xf32>
    %cst_19 = arith.constant dense<0.000000e+00> : vector<8x128xf32>
    %22 = tpu.matmul %21, %5, %cst_19 {dimension_numbers = #tpu.dot_dimension_numbers<[1], [0], [0], [1], [0, 0, 1, 1], [], []>} : vector<8x32xf32>, vector<32x128xf32>, vector<8x128xf32> -> vector<8x128xf32>
    %23 = vector.extract_strided_slice %7 {offsets = [0, 0], sizes = [1, 128], strides = [1, 1]} : vector<3x128xf32> to vector<1x128xf32>
    %24 = vector.broadcast %23 : vector<1x128xf32> to vector<8x128xf32>
    %25 = arith.addf %22, %24 : vector<8x128xf32>
    %26 = math.tanh %25 : vector<8x128xf32>
    %27 = vector.extract_strided_slice %7 {offsets = [1, 0], sizes = [1, 128], strides = [1, 1]} : vector<3x128xf32> to vector<1x128xf32>
    %28 = vector.broadcast %27 : vector<1x128xf32> to vector<8x128xf32>
    %29 = arith.mulf %26, %28 : vector<8x128xf32>
    %30 = vector.extract_strided_slice %7 {offsets = [2, 0], sizes = [1, 128], strides = [1, 1]} : vector<3x128xf32> to vector<1x128xf32>
    %31 = vector.broadcast %30 : vector<1x128xf32> to vector<8x128xf32>
    %32 = arith.addf %29, %31 : vector<8x128xf32>
    %c0_20 = arith.constant 0 : index
    %c0_21 = arith.constant 0 : index
    %33 = vector.load %arg8[%c0_20, %c0_21] : memref<8x128xf32, #tpu.memory_space<vmem>>, vector<8x128xf32>
    tpu.vector_store %arg8[%c0_20, %c0_21], %32 {strides = array<i32>} : memref<8x128xf32, #tpu.memory_space<vmem>>, vector<8x128xf32>,
    return
  }
}

</mosaic_0001>

<bundles_post_ra>
// kernel: tpu_custom_call.1
= control target key start
LH: loop header
LB: loop body
LE: loop exit
PB: predicated region body
PF: predicated region fallthrough
CT: control target
= control target key end

     0   :  { %13 = vsyncpa [#allocation3], 0  ;;  %s784_s0 = inlined_call_operand.hbm [shape: f32[8,16], index: 0, kind: input, shape index: {}]   ;;  %s785_s1 = inlined_call_operand.vmem [shape: f32[8,4], index: 1, kind: input, shape index: {}]   ;;  %s786_s2 = inlined_call_operand.hbm [shape: f32[16,32], index: 2, kind: input, shape index: {}]   ;;  %s787_s3 = inlined_call_operand.hbm [shape: f32[4,32], index: 3, kind: input, shape index: {}]   ;;  %s788_s4 = inlined_call_operand.vmem [shape: f32[2,32], index: 4, kind: input, shape index: {}]   ;;  %s789_s5 = inlined_call_operand.hbm [shape: f32[32,32], index: 5, kind: input, shape index: {}]   ;;  %s790_s6 = inlined_call_operand.vmem [shape: f32[32,128], index: 6, kind: input, shape index: {}]   ;;  %s791_s7 = inlined_call_operand.vmem [shape: f32[3,128], index: 7, kind: input, shape index: {}]   ;;  %s792_s8 = inlined_call_operand.hbm [shape: f32[8,128], index: 8, kind: output, shape index: {}]  }
   0x1   :  { %14 = vsyncpa [#allocation6], 0 }
   0x2   :  { %15 = vsyncpa [#allocation9], 0 }
   0x3   :  { %16 = vsyncpa [#allocation4], 0  ;;  %s638_s27 = smov [#allocation5]   ;;  %s520_s9 = scalar_lea.hbm %s786_s2, 256 }
   0x4   :  { %s34_s28 = sshll.u32 %s638_s27, 4  ;;  %p521_p0 = scmp.ne.s32.totalorder %s786_s2, %s520_s9  ;;  %s35_s28 = int_to_ptr.vmem [resolvable:$true] %s34_s28 }
   0x5   :  { %p524_p1 = scmp.lt.u32.totalorder %s520_s9, %s786_s2 }
   0x7   :  { %p526_p2 = pnand %p524_p1, %p521_p0 }
   0x9   :  { %529 = shalt.err (!%p526_p2)
}
   0xa   :  { %s530_s14 = scalar_lea.vmem %s35_s28, 256  ;;  %p535_p4 = scmp.lt.s32.totalorder %s35_s28, %s35_s28 }
   0xb   :  { %p531_p3 = scmp.ne.s32.totalorder %s35_s28, %s530_s14  ;;  %p536_p5 = scmp.lt.s32.totalorder %s530_s14, %s530_s14 }
   0xd   :  { %p537_p6 = por %p536_p5, %p535_p4 }
   0xf   :  { %p538_p7 = pnand %p537_p6, %p531_p3 }
  0x11   :  { %541 = shalt.err (!%p538_p7)
}
  0x12   :  { %s639_s15 = smov 128   ;;  %s640_s16 = smov 8  }
  0x13   :  { %40 = dma.hbm_to_vmem [thread:$0]  %s786_s2, 256, %s35_s28, [#allocation6], %s639_s15, %s639_s15, %s640_s16  }
  0x14   :  { %s641_s19 = smov [#allocation2]   ;;  %s642_s21 = smov [#allocation7]  }
  0x15   :  { %s23_s20 = sshll.u32 %s641_s19, 4  ;;  %s47_s22 = sshll.u32 %s642_s21, 4  ;;  %s24_s20 = int_to_ptr.vmem [resolvable:$true] %s23_s20  ;;  %s48_s22 = int_to_ptr.vmem [resolvable:$true] %s47_s22 }
  0x16   :  { %s542_s25 = scalar_lea.hbm %s784_s0, 128 }
  0x17   :  { %p543_p8 = scmp.ne.s32.totalorder %s784_s0, %s542_s25  ;;  %p546_p9 = scmp.lt.u32.totalorder %s542_s25, %s784_s0 }
  0x19   :  { %p548_p10 = pnand %p546_p9, %p543_p8 }
  0x1b   :  { %551 = shalt.err (!%p548_p10)
}
  0x1c   :  { %s552_s2 = scalar_lea.vmem %s24_s20, 128  ;;  %p557_p12 = scmp.lt.s32.totalorder %s24_s20, %s24_s20 }
  0x1d   :  { %p553_p11 = scmp.ne.s32.totalorder %s24_s20, %s552_s2  ;;  %p558_p13 = scmp.lt.s32.totalorder %s552_s2, %s552_s2 }
  0x1f   :  { %p559_p0 = por %p558_p13, %p557_p12 }
  0x21   :  { %p560_p1 = pnand %p559_p0, %p553_p11 }
  0x23   :  { %563 = shalt.err (!%p560_p1)
}
  0x24   :  { %26 = dma.hbm_to_vmem [thread:$0]  %s784_s0, 128, %s24_s20, [#allocation3]  }
  0x25   :  { %s564_s12 = scalar_lea.hbm %s787_s3, 64 }
  0x26   :  { %p565_p2 = scmp.ne.s32.totalorder %s787_s3, %s564_s12  ;;  %p568_p3 = scmp.lt.u32.totalorder %s564_s12, %s787_s3 }
  0x28   :  { %p570_p4 = pnand %p568_p3, %p565_p2 }
  0x2a   :  { %573 = shalt.err (!%p570_p4)
}
  0x2b   :  { %s574_s19 = scalar_lea.vmem %s48_s22, 64  ;;  %p579_p6 = scmp.lt.s32.totalorder %s48_s22, %s48_s22 }
  0x2c   :  { %p575_p5 = scmp.ne.s32.totalorder %s48_s22, %s574_s19  ;;  %p580_p7 = scmp.lt.s32.totalorder %s574_s19, %s574_s19 }
  0x2e   :  { %p581_p8 = por %p580_p7, %p579_p6 }
  0x30   :  { %p582_p9 = pnand %p581_p8, %p575_p5 }
  0x32   :  { %585 = shalt.err (!%p582_p9)
}
  0x33   :  { %50 = dma.hbm_to_vmem [thread:$0]  %s787_s3, 64, %s48_s22, [#allocation6]  }
  0x34   :  { %s643_s21 = smov [#allocation8]   ;;  %s586_s26 = scalar_lea.hbm %s789_s5, 512 }
  0x35   :  { %s58_s23 = sshll.u32 %s643_s21, 4  ;;  %p587_p10 = scmp.ne.s32.totalorder %s789_s5, %s586_s26  ;;  %s59_s23 = int_to_ptr.vmem [resolvable:$true] %s58_s23 }
  0x36   :  { %p590_p11 = scmp.lt.u32.totalorder %s586_s26, %s789_s5 }
  0x38   :  { %p592_p12 = pnand %p590_p11, %p587_p10 }
  0x3a   :  { %595 = shalt.err (!%p592_p12)
}
  0x3b   :  { %s596_s28 = scalar_lea.vmem %s59_s23, 512  ;;  %p601_p0 = scmp.lt.s32.totalorder %s59_s23, %s59_s23 }
  0x3c   :  { %p597_p13 = scmp.ne.s32.totalorder %s59_s23, %s596_s28  ;;  %p602_p1 = scmp.lt.s32.totalorder %s596_s28, %s596_s28 }
  0x3e   :  { %p603_p2 = por %p602_p1, %p601_p0 }
  0x40   :  { %p604_p3 = pnand %p603_p2, %p597_p13 }
  0x42   :  { %607 = shalt.err (!%p604_p3)
}
  0x43   :  { %64 = dma.hbm_to_vmem [thread:$0]  %s789_s5, 512, %s59_s23, [#allocation9], %s639_s15, %s639_s15, %s640_s16  }
  0x44   :  { %630 = dma.done.wait [#allocation3], 128  }
  0x45   :  { %631 = vsyncadd [#allocation3], 4294967168 }
  0x46   :  { %632 = dma.done.wait [#allocation6], 320  }
  0x47   :  { %633 = vsyncadd [#allocation6], 4294966976 }
  0x48   :  { %634 = dma.done.wait [#allocation9], 512  }
  0x49   :  { %635 = vsyncadd [#allocation9], 4294966784  ;;  %v644_v0 = vmov 0.0|0.0   ;;  %v645_v1 = vmov 0.0   ;;  %vm646_vm0 = vmmov 0   ;;  %vm100_vm1 = vcmask 1043456  }
  0x4a   :  { %493 = vmatprep.subr.bf16.mxu1 %v644_v0  ;;  %459 = vmatprep.subr.mxu0 %v645_v1  ;;  %vm96_vm2 = vcmask 31744   ;;  %v83_v2 = vld [vmem:[#allocation5] sm:$0xff]  ;;  %v84_v3 = vld [vmem:[#allocation5 + $0x8] sm:$0xff]  ;;  %v85_v4 = vld [vmem:[#allocation7] sm:$0xf]  ;;  %vm174_vm3 = vcmask 130048   ;;  %v248_v17 = vlaneseq }
  0x4b   :  { %461 = vmatprep.mubr.msk.f32.mxu0 %vm646_vm0, %v645_v1  ;;  %468 = vmatprep.mubr.msk.f32.mxu1 %vm646_vm0, %v645_v1  ;;  %v494_v5 = vpack.c.bf16 %v84_v3, %v83_v2  ;;  %v82_v6 = vld [vmem:[%s785_s1] sm:$0xff]  ;;  %v88_v11 = vld [vmem:[#allocation8 + $0x10] sm:$0xff]  ;;  %v89_v12 = vld [vmem:[#allocation8 + $0x18] sm:$0xff]  ;;  %vm258_vm4 = vcmask 261120  }
  0x4c   :  { %460 = vmatpush3.msk.msra.mxu0 %vm100_vm1, %v85_v4  ;;  %v81_v7 = vld [vmem:[#allocation2] sm:$0xff]  ;;  %v500_v13 = vpack.c.bf16 %v89_v12, %v88_v11  ;;  %v91_v15 = vld [vmem:[%s790_s6 + $0x8] sm:$0xff]  ;;  %v249_v18 = vshrl.u32 %v248_v17, 7  ;;  %v92_v29 = vld [vmem:[%s790_s6 + $0x10] sm:$0xff] }
  0x4d   :  { %462 = vmatmul.mubr.msk.f32.vlgmr.msra.gmra.mrb[0].mxu0 %vm96_vm2, %v82_v6  ;;  %496 = vmatprep.subr.bf16.mxu0 %v644_v0  ;;  %v86_v8 = vld [vmem:[#allocation8] sm:$0xff]  ;;  %v87_v9 = vld [vmem:[#allocation8 + $0x8] sm:$0xff] }
  0x4e   :  { %495 = vmatpush3.bf16.msra.mxu1 %v494_v5  ;;  %479 = vmatprep.mubr.msk.f32.mxu0 %vm646_vm0, %v645_v1  ;;  %v497_v10 = vpack.c.bf16 %v87_v9, %v86_v8  ;;  %v90_v14 = vld [vmem:[%s790_s6] sm:$0xff]  ;;  %v250_v19 = vsub.s32 0, %v249_v18  ;;  %v93_v30 = vld [vmem:[%s790_s6 + $0x18] sm:$0xff]  ;;  %v256_v32 = vsub.s32 1, %v249_v18  ;;  %v418_v43 = vsub.s32 2, %v249_v18  ;;  %s647_s6 = smov [#allocation10]  }
  0x4f   :  { %502 = vmatprep.subr.bf16.mxu1 %v644_v0  ;;  %v503_v16 = vpack.c.bf16 %v91_v15, %v90_v14  ;;  %v94_v21 = vld [vmem:[%s788_s4] sm:$0x3]  ;;  %v506_v31 = vpack.c.bf16 %v93_v30, %v92_v29  ;;  %s428_s0 = sshll.u32 %s647_s6, 4  ;;  %s429_s0 = int_to_ptr.vmem [resolvable:$true] %s428_s0 }
  0x50   :  { %498 = vmatpush3.bf16.msra.mxu0 %v497_v10  ;;  %v251_v23 = vrot.slane %v94_v21, %v250_v19  ;;  %v257_v33 = vrot.slane %v94_v21, %v256_v32  ;;  %v95_v38 = vld [vmem:[%s791_s7] sm:$0x7]  ;;  %s608_s20 = scalar_lea.vmem %s429_s0, 128  ;;  %p613_p5 = scmp.lt.s32.totalorder %s429_s0, %s429_s0 }
  0x51   :  { %469 = vmatmul.mubr.msk.f32.vlgmr.msra.gmra.mrb[0].mxu1 %vm174_vm3, %v81_v7  ;;  %499 = vmatprep.subr.bf16.mxu0 %v644_v0  ;;  %v336_v39 = vrot.slane %v95_v38, %v250_v19  ;;  %v414_v44 = vrot.slane %v95_v38, %v256_v32  ;;  %v419_v45 = vrot.slane %v95_v38, %v418_v43  ;;  %p609_p4 = scmp.ne.s32.totalorder %s429_s0, %s608_s20  ;;  %p614_p6 = scmp.lt.s32.totalorder %s608_s20, %s608_s20 }
  0x52   :  { %490 = vmatprep.mubr.msk.f32.mxu1 %vm646_vm0, %v645_v1  ;;  %504 = vmatpush3.bf16.msra.mxu1 %v503_v16 }
  0x53   :  { %505 = vmatprep.subr.bf16.mxu1 %v644_v0  ;;  %p615_p7 = por %p614_p6, %p613_p5 }
  0x54   :  { %501 = vmatpush3.bf16.msra.mxu0 %v500_v13 }
  0x55   :  { %p616_p8 = pnand %p615_p7, %p609_p4 }
  0x56   :  { %507 = vmatpush3.bf16.msra.mxu1 %v506_v31 }
 0x120   :  { %v170_v20 = vpop.f32.mrb[0].mxu0 }
 0x121   :  { %v463_v22 = vpop.f32.mrb[1].mxu0 }
 0x124   :  { %v244_v24 = vpop.f32.mrb[0].mxu1 }
 0x125   :  { %v245_v25 = vadd.f32 %v244_v24, %v170_v20  ;;  %v470_v26 = vpop.f32.mrb[1].mxu1 }
 0x127   :  { %v252_v27 = vadd.f32 %v251_v23, %v245_v25 }
 0x129   :  { %v253_v28 = vmax.f32 %v252_v27, 0.0 }
 0x12b   :  { %480 = vmatmul.mubr.msk.f32.vlgmr.msra.gmra.mrb[2].mxu0 %vm258_vm4, %v253_v28 }
 0x1fe   :  { %v328_v34 = vpop.f32.mrb[2].mxu0 }
 0x1ff   :  { %v329_v35 = vadd.f32 %v328_v34, %v257_v33  ;;  %v481_v36 = vpop.f32.mrb[3].mxu0 }
 0x201   :  { %v332_v37 = vmax.f32 %v329_v35, 0.0 }
 0x203   :  { %491 = vmatmul.mubr.msk.f32.vlgmr.msra.gmra.mrb[2].mxu1 %vm258_vm4, %v332_v37 }
 0x2d6   :  { %v406_v40 = vpop.f32.mrb[2].mxu1 }
 0x2d7   :  { %v407_v41 = vadd.f32 %v406_v40, %v336_v39  ;;  %v492_v42 = vpop.f32.mrb[3].mxu1 }
 0x2d9   :  { %518 = vtanh.f32 %v407_v41 }
 0x2e3   :  { %v519_v46 = vpop.eup %518 }
 0x2e4   :  { %v415_v47 = vmul.f32 %v519_v46, %v414_v44 }
 0x2e6   :  { %v420_v48 = vadd.f32 %v419_v45, %v415_v47 }
 0x2e8   :  { %421 = vst [vmem:[#allocation10] sm:$0xff] %v420_v48 }
 0x2e9   :  { %619 = shalt.err (!%p616_p8)
}
 0x2ea   :  { %s620_s23 = scalar_lea.hbm %s792_s8, 128 }
 0x2eb   :  { %p621_p9 = scmp.ne.s32.totalorder %s792_s8, %s620_s23  ;;  %p624_p10 = scmp.lt.u32.totalorder %s620_s23, %s792_s8 }
 0x2ed   :  { %p626_p11 = pnand %p624_p10, %p621_p9 }
 0x2ef   :  { %629 = shalt.err (!%p626_p11)
}
 0x2f0   :  { %431 = dma.vmem_to_hbm [thread:$0]  %s429_s0, 128, %s792_s8, [#allocation4]  }
 0x2f1   :  { %636 = dma.done.wait [#allocation4], 128  }
 0x2f2   :  { %637 = vsyncadd [#allocation4], 4294967168 }
 0x2f3   :  { %435 = vsyncpa [#allocation3], 1 }
 0x2f4   :  { %436 = vsyncpa [#allocation6], 1 }
 0x2f5   :  { %437 = vsyncpa [#allocation9], 1 }
 0x2f6   :  { %438 = vsyncpa [#allocation4], 1 }

</bundles_post_ra>
